<compile_context>
chip_gen: v7x
topology: tpu7x:2x2x1
jax: 0.10.0
libtpu: 0.0.40
codegen_flags: <defaults>
</compile_context>

<pallas_src>
import functools

import numpy as np

import jax
import jax.numpy as jnp
from jax import lax
from jax.experimental import pallas as pl
from jax.experimental.pallas import tpu as pltpu

# ----------------------------- cfg constants (py-faster-rcnn defaults) ------
RPN_POSITIVE_OVERLAP = 0.7
RPN_NEGATIVE_OVERLAP = 0.3
RPN_FG_FRACTION = 0.5
RPN_BATCHSIZE = 256
RPN_BBOX_INSIDE_WEIGHT = 1.0
RPN_POSITIVE_WEIGHT = -1.0
RPN_CLOBBER_POSITIVES = False


# ----------------------------- generate_anchors (numpy, deterministic) ------
def _whctrs(anchor):
    w = anchor[2] - anchor[0] + 1
    h = anchor[3] - anchor[1] + 1
    x_ctr = anchor[0] + 0.5 * (w - 1)
    y_ctr = anchor[1] + 0.5 * (h - 1)
    return w, h, x_ctr, y_ctr


def _mkanchors(ws, hs, x_ctr, y_ctr):
    ws = ws[:, np.newaxis]
    hs = hs[:, np.newaxis]
    return np.hstack((x_ctr - 0.5 * (ws - 1), y_ctr - 0.5 * (hs - 1),
                      x_ctr + 0.5 * (ws - 1), y_ctr + 0.5 * (hs - 1)))


def _ratio_enum(anchor, ratios):
    w, h, x_ctr, y_ctr = _whctrs(anchor)
    size = w * h
    size_ratios = size / ratios
    ws = np.round(np.sqrt(size_ratios))
    hs = np.round(ws * ratios)
    return _mkanchors(ws, hs, x_ctr, y_ctr)


def _scale_enum(anchor, scales):
    w, h, x_ctr, y_ctr = _whctrs(anchor)
    ws = w * scales
    hs = h * scales
    return _mkanchors(ws, hs, x_ctr, y_ctr)


def generate_anchors(base_size=16, ratios=np.array([0.5, 1, 2]),
                     scales=2 ** np.arange(3, 6)):
    base_anchor = np.array([1, 1, base_size, base_size], dtype=np.float64) - 1
    ratio_anchors = _ratio_enum(base_anchor, np.asarray(ratios, dtype=np.float64))
    anchors = np.vstack([_scale_enum(ratio_anchors[i, :], np.asarray(scales, dtype=np.float64))
                         for i in range(ratio_anchors.shape[0])])
    return anchors.astype(np.float32)


def _round_up(x, m):
    return ((x + m - 1) // m) * m


# ----------------------------- Pallas kernel --------------------------------
def _anchor_target_kernel(imhw_ref, anch_ref, gt_ref, gtt_ref, out_ref,
                          cache_ref, *, nt):
    # imhw_ref : SMEM (2,) f32          = [floor(im_h), floor(im_w)]  (scalar prefetch)
    # anch_ref : VMEM (16, N_pad) f32   — resident anchor constants, rows:
    #            0-3 x1,y1,x2,y2 | 4 valid | 5 area | 6 cx | 7 cy |
    #            8 1/w | 9 1/h | 10 log w | 11 log h | 12-15 zero
    # gt_ref   : VMEM (G_pad, 8) f32    — cols x1,y1,x2,y2,area,real,0,0 (gt on sublanes)
    # gtt_ref  : VMEM (8, G_pad) f32    — rows gcx,gcy,log gw,log gh,0.. (gt on lanes, MXU)
    # out_ref  : VMEM (8, N_pad) f32    — rows label,dx,dy,dw,dh,0,0,0
    # cache_ref: VMEM (G_pad+8, N_pad) f32 scratch — rows 0..G_pad-1: IoU,
    #            row G_pad: inside, G_pad+1: IoU>=0.7 flag, G_pad+2: IoU>=0.3 flag
    im_h = imhw_ref[0]
    im_w = imhw_ref[1]

    n_pad = anch_ref.shape[1]
    num_tiles = n_pad // nt

    gt = gt_ref[...]                      # (G_pad, 8)
    g_pad = gt.shape[0]
    gx1 = gt[:, 0:1]
    gy1 = gt[:, 1:2]
    gx2 = gt[:, 2:3]
    gy2 = gt[:, 3:4]
    g_area = gt[:, 4:5]
    g_real = gt[:, 5:6] > 0.5             # (G_pad, 1)

    # ---- pass 1: IoU for every anchor tile, cached in VMEM; gt_max reduce ----
    def iou_pass(t, gt_max):
        off = pl.multiple_of(t * nt, 128)
        a = anch_ref[:, pl.ds(off, nt)]                 # (16, nt)
        ax1 = a[0:1]
        ay1 = a[1:2]
        ax2 = a[2:3]
        ay2 = a[3:4]
        valid = a[4:5]
        a_area = a[5:6]

        # inside-image mask (allowed_border = 0); `valid` excludes padded lanes.
        inside = ((ax1 >= 0.0) & (ay1 >= 0.0) &
                  (ax2 < im_w) & (ay2 < im_h) & (valid > 0.5))      # (1, nt)

        iw_ = jnp.maximum(jnp.minimum(ax2, gx2) - jnp.maximum(ax1, gx1) + 1.0, 0.0)
        ih_ = jnp.maximum(jnp.minimum(ay2, gy2) - jnp.maximum(ay1, gy1) + 1.0, 0.0)
        inter = iw_ * ih_                                           # (G_pad, nt)
        ua = a_area + g_area - inter

        # IoU feeds only max/argmax/equality paths -> EUP approx reciprocal,
        # no exact f32 divide anywhere in the kernel.
        ov = inter * pl.reciprocal(ua, approx=True)
        ov = jnp.where(g_real, ov, 0.0)        # zero-area / padded gt rows -> 0
        ov = jnp.where(inside, ov, -1.0)       # outside-image / padded anchors -> -1

        # Exact, divide-free 0.7 / 0.3 threshold flags via cross-multiplication.
        pair_ok = g_real & inside
        pos_f = jnp.max(
            jnp.where(pair_ok & (inter >= RPN_POSITIVE_OVERLAP * ua), 1.0, 0.0),
            axis=0, keepdims=True)
        ge3_f = jnp.max(
            jnp.where(pair_ok & (inter >= RPN_NEGATIVE_OVERLAP * ua), 1.0, 0.0),
            axis=0, keepdims=True)
        inside_f = jnp.where(inside, 1.0, 0.0)

        flags = jnp.concatenate(
            [inside_f, pos_f, ge3_f, jnp.zeros((5, nt), jnp.float32)], axis=0)
        cache_ref[:, pl.ds(off, nt)] = jnp.concatenate([ov, flags], axis=0)

        return jnp.maximum(gt_max, jnp.max(ov, axis=1, keepdims=True))

    gt_max = lax.fori_loop(0, num_tiles, iou_pass,
                           jnp.full((g_pad, 1), -jnp.inf, jnp.float32))
    gt_max = jnp.where(gt_max == 0.0, 1e-5, gt_max)     # reference's 1e-5 fixup

    gtt = gtt_ref[...]                    # (8, G_pad)

    # ---- pass 2: labels + bbox targets per tile from the cached IoU ----------
    def label_pass(t, carry):
        off = pl.multiple_of(t * nt, 128)
        c = cache_ref[:, pl.ds(off, nt)]                # (G_pad + 8, nt)
        ov = c[0:g_pad]
        inside = c[g_pad:g_pad + 1] > 0.5
        pos = c[g_pad + 1:g_pad + 2] > 0.5
        ge3 = c[g_pad + 2:g_pad + 3] > 0.5

        max_ov = jnp.max(ov, axis=0, keepdims=True)                   # (1, nt)
        keep_cnt = jnp.sum((ov == gt_max).astype(jnp.float32),
                           axis=0, keepdims=True)                     # (1, nt)
        row_idx = lax.broadcasted_iota(jnp.int32, ov.shape, 0)
        argmax = jnp.min(jnp.where(ov == max_ov, row_idx, g_pad),
                         axis=0, keepdims=True)                       # first-max index
        onehot = (row_idx == argmax).astype(jnp.float32)              # (G_pad, nt)

        labels = jnp.full_like(max_ov, -1.0)
        if not RPN_CLOBBER_POSITIVES:
            labels = jnp.where(ge3, labels, 0.0)        # max IoU < 0.3 -> 0
        labels = jnp.where(keep_cnt > 0.0, 1.0, labels) # best anchor(s) per gt
        labels = jnp.where(pos, 1.0, labels)            # max IoU >= 0.7
        if RPN_CLOBBER_POSITIVES:
            labels = jnp.where(ge3, labels, 0.0)
        labels = jnp.where(inside, labels, -1.0)        # _unmap(..., fill=-1)

        # TODO(synk): random fg/bg subsampling (np.random.permutation with
        # data-dependent counts, RPN_BATCHSIZE/RPN_FG_FRACTION) has no clean
        # Pallas equivalent; omitted.

        # One-hot gather of the argmax gt stats fused into a single MXU matmul:
        # (8, G_pad) x (G_pad, nt) -> (8, nt)  — kept f32, MXU slot has full slack.
        sel = jnp.dot(gtt, onehot, preferred_element_type=jnp.float32)

        a = anch_ref[:, pl.ds(off, nt)]
        acx = a[6:7]
        acy = a[7:8]
        inv_aw = a[8:9]
        inv_ah = a[9:10]
        log_aw = a[10:11]
        log_ah = a[11:12]

        # bbox_transform_batch with host-precomputed anchor constants.
        dx = jnp.where(inside, (sel[0:1] - acx) * inv_aw, 0.0)   # _unmap(..., fill=0)
        dy = jnp.where(inside, (sel[1:2] - acy) * inv_ah, 0.0)
        dw = jnp.where(inside, sel[2:3] - log_aw, 0.0)
        dh = jnp.where(inside, sel[3:4] - log_ah, 0.0)

        tile = jnp.concatenate(
            [labels, dx, dy, dw, dh, jnp.zeros((3, nt), jnp.float32)], axis=0)
        out_ref[:, pl.ds(off, nt)] = tile               # one lane-dense store/tile
        return carry

    lax.fori_loop(0, num_tiles, label_pass, 0)


# ----------------------------- wrapper ---------------------------------------
def anchor_target_layer(rpn_cls_score, gt_boxes, im_info, num_boxes,
                        feat_stride, scales, ratios):
    """JAX/Pallas re-implementation of _AnchorTargetLayer.forward.

    Returns [labels, bbox_targets, bbox_inside_weights, bbox_outside_weights]
    with the same shapes/dtypes as the PyTorch module.
    """
    del num_boxes  # not used by the reference forward
    B = gt_boxes.shape[0]
    G = gt_boxes.shape[1]
    H, W = rpn_cls_score.shape[2], rpn_cls_score.shape[3]

    # ---- static anchor grid (plain numpy glue) ----
    anchors = generate_anchors(scales=np.array(scales), ratios=np.array(ratios))
    A = anchors.shape[0]
    shift_x = np.arange(0, W) * feat_stride
    shift_y = np.arange(0, H) * feat_stride
    sx, sy = np.meshgrid(shift_x, shift_y)
    shifts = np.vstack((sx.ravel(), sy.ravel(), sx.ravel(), sy.ravel())).transpose()
    K = shifts.shape[0]
    all_anchors = (anchors.reshape(1, A, 4) + shifts.reshape(K, 1, 4)).reshape(K * A, 4)
    all_anchors = all_anchors.astype(np.float64)
    N = K * A

    # lane-tile size adaptive to G_pad: keep live (G_pad, NT) values in the vreg file.
    G_pad = max(8, _round_up(G, 8))
    if G_pad <= 8:
        nt_base = 1024
    elif G_pad <= 16:
        nt_base = 512
    elif G_pad <= 32:
        nt_base = 256
    else:
        nt_base = 128
    NT = min(nt_base, _round_up(N, 128))
    N_pad = _round_up(N, NT)

    # packed (16, N_pad) anchor constants (static), host math in float64 -> f32.
    ax1 = all_anchors[:, 0]
    ay1 = all_anchors[:, 1]
    ax2 = all_anchors[:, 2]
    ay2 = all_anchors[:, 3]
    aw = ax2 - ax1 + 1.0
    ah = ay2 - ay1 + 1.0
    anch_packed = np.zeros((16, N_pad), np.float32)
    anch_packed[0, :N] = ax1
    anch_packed[1, :N] = ay1
    anch_packed[2, :N] = ax2
    anch_packed[3, :N] = ay2
    anch_packed[4, :N] = 1.0                      # valid
    anch_packed[5, :N] = aw * ah                  # area
    anch_packed[6, :N] = ax1 + 0.5 * aw           # cx
    anch_packed[7, :N] = ay1 + 0.5 * ah           # cy
    anch_packed[8, :N] = 1.0 / aw                 # exact host reciprocal
    anch_packed[9, :N] = 1.0 / ah
    anch_packed[10, :N] = np.log(aw)
    anch_packed[11, :N] = np.log(ah)
    anch_packed[5, N:] = 1.0                      # benign padded lanes (masked anyway)
    anch_packed[8, N:] = 1.0
    anch_packed[9, N:] = 1.0
    anch_packed = jnp.asarray(anch_packed)

    # per-gt constants (tiny XLA glue on (B, G))
    gt_f = gt_boxes.astype(jnp.float32)
    gx1 = gt_f[:, :, 0]
    gy1 = gt_f[:, :, 1]
    gx2 = gt_f[:, :, 2]
    gy2 = gt_f[:, :, 3]
    gw = gx2 - gx1 + 1.0
    gh = gy2 - gy1 + 1.0
    g_area = gw * gh
    g_real = jnp.logical_not((gw == 1.0) & (gh == 1.0)).astype(jnp.float32)
    gcx = gx1 + 0.5 * gw
    gcy = gy1 + 0.5 * gh
    log_gw = jnp.log(jnp.maximum(gw, 1e-8))
    log_gh = jnp.log(jnp.maximum(gh, 1e-8))

    gt_sub = jnp.zeros((B, G_pad, 8), jnp.float32)
    gt_sub = gt_sub.at[:, :G, 0].set(gx1).at[:, :G, 1].set(gy1)
    gt_sub = gt_sub.at[:, :G, 2].set(gx2).at[:, :G, 3].set(gy2)
    gt_sub = gt_sub.at[:, :G, 4].set(g_area).at[:, :G, 5].set(g_real)
    gt_sub = gt_sub.reshape(B * G_pad, 8)

    gt_lane = jnp.zeros((B, 8, G_pad), jnp.float32)
    gt_lane = gt_lane.at[:, 0, :G].set(gcx).at[:, 1, :G].set(gcy)
    gt_lane = gt_lane.at[:, 2, :G].set(log_gw).at[:, 3, :G].set(log_gh)
    gt_lane = gt_lane.reshape(B * 8, G_pad)

    # scalar prefetch: floor(im_h), floor(im_w) — matches the reference's long() casts
    im_hw = jnp.stack([jnp.floor(im_info[0, 0]),
                       jnp.floor(im_info[0, 1])]).astype(jnp.float32)

    kernel = functools.partial(_anchor_target_kernel, nt=NT)

    out = pl.pallas_call(
        kernel,
        out_shape=jax.ShapeDtypeStruct((B * 8, N_pad), jnp.float32),
        grid_spec=pltpu.PrefetchScalarGridSpec(
            num_scalar_prefetch=1,
            grid=(B,),
            in_specs=[
                pl.BlockSpec((16, N_pad), lambda b, s: (0, 0)),      # anchors, resident
                pl.BlockSpec((G_pad, 8), lambda b, s: (b, 0)),       # gt on sublanes
                pl.BlockSpec((8, G_pad), lambda b, s: (b, 0)),       # gt on lanes (MXU)
            ],
            out_specs=pl.BlockSpec((8, N_pad), lambda b, s: (b, 0)),
            scratch_shapes=[pltpu.VMEM((G_pad + 8, N_pad), jnp.float32)]),
        compiler_params=pltpu.CompilerParams(
            dimension_semantics=("parallel",),
            vmem_limit_bytes=32 * 1024 * 1024),
    )(im_hw, anch_packed, gt_sub, gt_lane)

    out = out.reshape(B, 8, N_pad)
    labels_flat = out[:, 0, :N]                                   # (B, N)
    targets_flat = jnp.transpose(out[:, 1:5, :N], (0, 2, 1))      # (B, N, 4)

    # ---- weights (glue, elementwise) ----
    inside_w = jnp.where(labels_flat == 1.0, RPN_BBOX_INSIDE_WEIGHT, 0.0)
    # Reference uses `i` left over from the sampling loop, i.e. the LAST batch
    # element's count of labels >= 0 — reproduced here.
    num_examples = jnp.sum(labels_flat[B - 1] >= 0).astype(jnp.float32)
    positive_weights = 1.0 / num_examples
    negative_weights = 1.0 / num_examples
    # TODO(synk): RPN_POSITIVE_WEIGHT > 0 branch (assert-only in reference) not implemented.
    outside_w = jnp.where(labels_flat == 1.0, positive_weights,
                          jnp.where(labels_flat == 0.0, negative_weights, 0.0))

    # ---- final reshapes (same as the PyTorch view/permute chain) ----
    labels_final = labels_flat.reshape(B, H, W, A).transpose(0, 3, 1, 2)
    labels_final = labels_final.reshape(B, 1, A * H, W)

    bbox_targets = targets_flat.reshape(B, H, W, A * 4).transpose(0, 3, 1, 2)

    iw = jnp.broadcast_to(inside_w[..., None], (B, N, 4))
    iw = iw.reshape(B, H, W, 4 * A).transpose(0, 3, 1, 2)
    ow = jnp.broadcast_to(outside_w[..., None], (B, N, 4))
    ow = ow.reshape(B, H, W, 4 * A).transpose(0, 3, 1, 2)

    return [labels_final, bbox_targets, iw, ow]


# ----------------------------- demo -----------------------------------------
if __name__ == "__main__":
    key = jax.random.PRNGKey(0)
    B, H, W = 2, 8, 8
    feat_stride = 16
    scales = [2, 4]            # small scales so anchors fit a 128x128 image
    ratios = [0.5, 1, 2]
    A = len(scales) * len(ratios)
    G = 5                      # gt slots per image (with zero padding rows)

    k1, k2, k3 = jax.random.split(key, 3)
    rpn_cls_score = jax.random.normal(k1, (B, 2 * A, H, W), jnp.float32)

    # build gt boxes: 3 real boxes + 2 zero-padding rows per image
    xy = jax.random.uniform(k2, (B, G, 2), minval=0.0, maxval=70.0)
    wh = jax.random.uniform(k3, (B, G, 2), minval=16.0, maxval=48.0)
    gt = jnp.concatenate([xy, xy + wh, jnp.ones((B, G, 1))], axis=-1)
    pad_mask = (jnp.arange(G) < 3).astype(jnp.float32)[None, :, None]
    gt_boxes = gt * pad_mask                                   # (B, G, 5)

    im_info = jnp.tile(jnp.array([[128.0, 128.0, 1.0]], jnp.float32), (B, 1))
    num_boxes = jnp.array([3, 3], jnp.int32)

    outs = anchor_target_layer(rpn_cls_score, gt_boxes, im_info, num_boxes,
                               feat_stride, scales, ratios)
    outs = [jax.block_until_ready(o) for o in outs]

    assert outs[0].shape == (B, 1, A * H, W)
    assert outs[1].shape == (B, A * 4, H, W)
    assert outs[2].shape == (B, 4 * A, H, W)
    assert outs[3].shape == (B, 4 * A, H, W)
    assert all(bool(jnp.all(jnp.isfinite(o))) for o in outs)
    print("KERNEL_OK")
</pallas_src>

<mosaic_0001>
module attributes {stable_mosaic.version = 11 : i64} {
  func.func @_anchor_target_kernel(%arg0: i32, %arg1: memref<2xf32, #tpu.memory_space<smem>>, %arg2: memref<16x384xf32, #tpu.memory_space<vmem>>, %arg3: memref<8x8xf32, #tpu.memory_space<vmem>>, %arg4: memref<8x8xf32, #tpu.memory_space<vmem>>, %arg5: memref<8x384xf32, #tpu.memory_space<vmem>>, %arg6: memref<16x384xf32, #tpu.memory_space<vmem>>) attributes {dimension_semantics = [#tpu.dimension_semantics<parallel>], iteration_bounds = array<i64: 2>, scalar_prefetch = 1 : i64, scratch_operands = 1 : i64, tpu.core_type = #tpu.core_type<tc>, window_params = [{pipeline_mode = #tpu.pipeline_mode<synchronous>, transform_indices = @transform_0, window_bounds = array<i64: 16, 384>}, {transform_indices = @transform_1, window_bounds = array<i64: 8, 8>}, {transform_indices = @transform_2, window_bounds = array<i64: 8, 8>}, {transform_indices = @transform_3, window_bounds = array<i64: 8, 384>}]} {
    %c0 = arith.constant 0 : index
    %0 = memref.load %arg1[%c0] : memref<2xf32, #tpu.memory_space<smem>>
    %c1 = arith.constant 1 : index
    %1 = memref.load %arg1[%c1] : memref<2xf32, #tpu.memory_space<smem>>
    %c0_0 = arith.constant 0 : index
    %c0_1 = arith.constant 0 : index
    %2 = vector.load %arg3[%c0_0, %c0_1] : memref<8x8xf32, #tpu.memory_space<vmem>>, vector<8x8xf32>
    %3 = vector.extract_strided_slice %2 {offsets = [0, 0], sizes = [8, 1], strides = [1, 1]} : vector<8x8xf32> to vector<8x1xf32>
    %4 = vector.extract_strided_slice %2 {offsets = [0, 1], sizes = [8, 1], strides = [1, 1]} : vector<8x8xf32> to vector<8x1xf32>
    %5 = vector.extract_strided_slice %2 {offsets = [0, 2], sizes = [8, 1], strides = [1, 1]} : vector<8x8xf32> to vector<8x1xf32>
    %6 = vector.extract_strided_slice %2 {offsets = [0, 3], sizes = [8, 1], strides = [1, 1]} : vector<8x8xf32> to vector<8x1xf32>
    %7 = vector.extract_strided_slice %2 {offsets = [0, 4], sizes = [8, 1], strides = [1, 1]} : vector<8x8xf32> to vector<8x1xf32>
    %8 = vector.extract_strided_slice %2 {offsets = [0, 5], sizes = [8, 1], strides = [1, 1]} : vector<8x8xf32> to vector<8x1xf32>
    %cst = arith.constant 5.000000e-01 : f32
    %9 = vector.broadcast %cst : f32 to vector<8x1xf32>
    %10 = arith.cmpf ogt, %8, %9 : vector<8x1xf32>
    %cst_2 = arith.constant 0xFF800000 : f32
    %11 = vector.broadcast %cst_2 : f32 to vector<8x1xf32>
    %c0_i32 = arith.constant 0 : i32
    %c384_i32 = arith.constant 384 : i32
    %12 = arith.muli %c0_i32, %c384_i32 : i32
    %13 = tpu.assume_multiple %12, 128 : i32
    %c0_3 = arith.constant 0 : index
    %14 = arith.index_cast %13 : i32 to index
    %15 = vector.load %arg2[%c0_3, %14] : memref<16x384xf32, #tpu.memory_space<vmem>>, vector<16x384xf32>
    %16 = vector.extract_strided_slice %15 {offsets = [0, 0], sizes = [1, 384], strides = [1, 1]} : vector<16x384xf32> to vector<1x384xf32>
    %17 = vector.extract_strided_slice %15 {offsets = [1, 0], sizes = [1, 384], strides = [1, 1]} : vector<16x384xf32> to vector<1x384xf32>
    %18 = vector.extract_strided_slice %15 {offsets = [2, 0], sizes = [1, 384], strides = [1, 1]} : vector<16x384xf32> to vector<1x384xf32>
    %19 = vector.extract_strided_slice %15 {offsets = [3, 0], sizes = [1, 384], strides = [1, 1]} : vector<16x384xf32> to vector<1x384xf32>
    %20 = vector.extract_strided_slice %15 {offsets = [4, 0], sizes = [1, 384], strides = [1, 1]} : vector<16x384xf32> to vector<1x384xf32>
    %21 = vector.extract_strided_slice %15 {offsets = [5, 0], sizes = [1, 384], strides = [1, 1]} : vector<16x384xf32> to vector<1x384xf32>
    %cst_4 = arith.constant 0.000000e+00 : f32
    %22 = vector.broadcast %cst_4 : f32 to vector<1x384xf32>
    %23 = arith.cmpf oge, %16, %22 : vector<1x384xf32>
    %cst_5 = arith.constant 0.000000e+00 : f32
    %24 = vector.broadcast %cst_5 : f32 to vector<1x384xf32>
    %25 = arith.cmpf oge, %17, %24 : vector<1x384xf32>
    %26 = arith.andi %23, %25 : vector<1x384xi1>
    %27 = vector.broadcast %1 : f32 to vector<1x384xf32>
    %28 = arith.cmpf olt, %18, %27 : vector<1x384xf32>
    %29 = arith.andi %26, %28 : vector<1x384xi1>
    %30 = vector.broadcast %0 : f32 to vector<1x384xf32>
    %31 = arith.cmpf olt, %19, %30 : vector<1x384xf32>
    %32 = arith.andi %29, %31 : vector<1x384xi1>
    %cst_6 = arith.constant 5.000000e-01 : f32
    %33 = vector.broadcast %cst_6 : f32 to vector<1x384xf32>
    %34 = arith.cmpf ogt, %20, %33 : vector<1x384xf32>
    %35 = arith.andi %32, %34 : vector<1x384xi1>
    %36 = vector.broadcast %18 : vector<1x384xf32> to vector<8x384xf32>
    %37 = vector.broadcast %5 : vector<8x1xf32> to vector<8x384xf32>
    %38 = arith.minimumf %36, %37 : vector<8x384xf32>
    %39 = vector.broadcast %16 : vector<1x384xf32> to vector<8x384xf32>
    %40 = vector.broadcast %3 : vector<8x1xf32> to vector<8x384xf32>
    %41 = arith.maximumf %39, %40 : vector<8x384xf32>
    %42 = arith.subf %38, %41 : vector<8x384xf32>
    %cst_7 = arith.constant 1.000000e+00 : f32
    %43 = vector.broadcast %cst_7 : f32 to vector<8x384xf32>
    %44 = arith.addf %42, %43 : vector<8x384xf32>
    %cst_8 = arith.constant 0.000000e+00 : f32
    %45 = vector.broadcast %cst_8 : f32 to vector<8x384xf32>
    %46 = arith.maximumf %44, %45 : vector<8x384xf32>
    %47 = vector.broadcast %19 : vector<1x384xf32> to vector<8x384xf32>
    %48 = vector.broadcast %6 : vector<8x1xf32> to vector<8x384xf32>
    %49 = arith.minimumf %47, %48 : vector<8x384xf32>
    %50 = vector.broadcast %17 : vector<1x384xf32> to vector<8x384xf32>
    %51 = vector.broadcast %4 : vector<8x1xf32> to vector<8x384xf32>
    %52 = arith.maximumf %50, %51 : vector<8x384xf32>
    %53 = arith.subf %49, %52 : vector<8x384xf32>
    %cst_9 = arith.constant 1.000000e+00 : f32
    %54 = vector.broadcast %cst_9 : f32 to vector<8x384xf32>
    %55 = arith.addf %53, %54 : vector<8x384xf32>
    %cst_10 = arith.constant 0.000000e+00 : f32
    %56 = vector.broadcast %cst_10 : f32 to vector<8x384xf32>
    %57 = arith.maximumf %55, %56 : vector<8x384xf32>
    %58 = arith.mulf %46, %57 : vector<8x384xf32>
    %59 = vector.broadcast %21 : vector<1x384xf32> to vector<8x384xf32>
    %60 = vector.broadcast %7 : vector<8x1xf32> to vector<8x384xf32>
    %61 = arith.addf %59, %60 : vector<8x384xf32>
    %62 = arith.subf %61, %58 : vector<8x384xf32>
    %63 = tpu.reciprocal %62 {approx = true} : vector<8x384xf32> -> vector<8x384xf32>
    %64 = arith.mulf %58, %63 : vector<8x384xf32>
    %cst_11 = arith.constant 0.000000e+00 : f32
    %65 = vector.shape_cast %10 : vector<8x1xi1> to vector<8x1xi1>
    %66 = vector.broadcast %65 : vector<8x1xi1> to vector<8x384xi1>
    %67 = vector.broadcast %cst_11 : f32 to vector<8x384xf32>
    %68 = arith.select %66, %64, %67 : vector<8x384xi1>, vector<8x384xf32>
    %cst_12 = arith.constant -1.000000e+00 : f32
    %69 = vector.shape_cast %35 : vector<1x384xi1> to vector<1x384xi1>
    %70 = vector.broadcast %69 : vector<1x384xi1> to vector<8x384xi1>
    %71 = vector.broadcast %cst_12 : f32 to vector<8x384xf32>
    %72 = arith.select %70, %68, %71 : vector<8x384xi1>, vector<8x384xf32>
    %73 = vector.broadcast %10 : vector<8x1xi1> to vector<8x384xi1>
    %74 = vector.broadcast %35 : vector<1x384xi1> to vector<8x384xi1>
    %75 = arith.andi %73, %74 : vector<8x384xi1>
    %cst_13 = arith.constant 0.699999988 : f32
    %76 = vector.broadcast %cst_13 : f32 to vector<8x384xf32>
    %77 = arith.mulf %76, %62 : vector<8x384xf32>
    %78 = arith.cmpf oge, %58, %77 : vector<8x384xf32>
    %79 = arith.andi %75, %78 : vector<8x384xi1>
    %cst_14 = arith.constant 1.000000e+00 : f32
    %cst_15 = arith.constant 0.000000e+00 : f32
    %80 = vector.broadcast %cst_14 : f32 to vector<8x384xf32>
    %81 = vector.broadcast %cst_15 : f32 to vector<8x384xf32>
    %82 = arith.select %79, %80, %81 : vector<8x384xi1>, vector<8x384xf32>
    %cst_16 = arith.constant dense<0xFF800000> : vector<384xf32>
    %83 = vector.multi_reduction <maximumf>, %82, %cst_16 [0] : vector<8x384xf32> to vector<384xf32>
    %84 = vector.shape_cast %83 : vector<384xf32> to vector<1x384xf32>
    %cst_17 = arith.constant 3.000000e-01 : f32
    %85 = vector.broadcast %cst_17 : f32 to vector<8x384xf32>
    %86 = arith.mulf %85, %62 : vector<8x384xf32>
    %87 = arith.cmpf oge, %58, %86 : vector<8x384xf32>
    %88 = arith.andi %75, %87 : vector<8x384xi1>
    %cst_18 = arith.constant 1.000000e+00 : f32
    %cst_19 = arith.constant 0.000000e+00 : f32
    %89 = vector.broadcast %cst_18 : f32 to vector<8x384xf32>
    %90 = vector.broadcast %cst_19 : f32 to vector<8x384xf32>
    %91 = arith.select %88, %89, %90 : vector<8x384xi1>, vector<8x384xf32>
    %cst_20 = arith.constant dense<0xFF800000> : vector<384xf32>
    %92 = vector.multi_reduction <maximumf>, %91, %cst_20 [0] : vector<8x384xf32> to vector<384xf32>
    %93 = vector.shape_cast %92 : vector<384xf32> to vector<1x384xf32>
    %cst_21 = arith.constant 1.000000e+00 : f32
    %cst_22 = arith.constant 0.000000e+00 : f32
    %94 = vector.broadcast %cst_21 : f32 to vector<1x384xf32>
    %95 = vector.broadcast %cst_22 : f32 to vector<1x384xf32>
    %96 = arith.select %35, %94, %95 : vector<1x384xi1>, vector<1x384xf32>
    %cst_23 = arith.constant 0.000000e+00 : f32
    %97 = vector.broadcast %cst_23 : f32 to vector<5x384xf32>
    %98 = tpu.concatenate %96, %84, %93, %97 in 0 : vector<1x384xf32>, vector<1x384xf32>, vector<1x384xf32>, vector<5x384xf32> -> vector<8x384xf32>
    %99 = tpu.concatenate %72, %98 in 0 : vector<8x384xf32>, vector<8x384xf32> -> vector<16x384xf32>
    %c0_24 = arith.constant 0 : index
    %100 = arith.index_cast %13 : i32 to index
    %101 = vector.load %arg6[%c0_24, %100] : memref<16x384xf32, #tpu.memory_space<vmem>>, vector<16x384xf32>
    tpu.vector_store %arg6[%c0_24, %100], %99 {strides = array<i32>} : memref<16x384xf32, #tpu.memory_space<vmem>>, vector<16x384xf32>,
    %cst_25 = arith.constant dense<0xFF800000> : vector<8xf32>
    %102 = vector.multi_reduction <maximumf>, %72, %cst_25 [1] : vector<8x384xf32> to vector<8xf32>
    %103 = vector.shape_cast %102 : vector<8xf32> to vector<8x1xf32>
    %104 = arith.maximumf %11, %103 : vector<8x1xf32>
    %c1_i32 = arith.constant 1 : i32
    %cst_26 = arith.constant 0.000000e+00 : f32
    %105 = vector.broadcast %cst_26 : f32 to vector<8x1xf32>
    %106 = arith.cmpf oeq, %104, %105 : vector<8x1xf32>
    %cst_27 = arith.constant 9.99999974E-6 : f32
    %107 = vector.broadcast %cst_27 : f32 to vector<8x1xf32>
    %108 = arith.select %106, %107, %104 : vector<8x1xi1>, vector<8x1xf32>
    %c0_28 = arith.constant 0 : index
    %c0_29 = arith.constant 0 : index
    %109 = vector.load %arg4[%c0_28, %c0_29] : memref<8x8xf32, #tpu.memory_space<vmem>>, vector<8x8xf32>
    %c0_i32_30 = arith.constant 0 : i32
    %c384_i32_31 = arith.constant 384 : i32
    %110 = arith.muli %c0_i32_30, %c384_i32_31 : i32
    %111 = tpu.assume_multiple %110, 128 : i32
    %c0_32 = arith.constant 0 : index
    %112 = arith.index_cast %111 : i32 to index
    %113 = vector.load %arg6[%c0_32, %112] : memref<16x384xf32, #tpu.memory_space<vmem>>, vector<16x384xf32>
    %114 = vector.extract_strided_slice %113 {offsets = [0, 0], sizes = [8, 384], strides = [1, 1]} : vector<16x384xf32> to vector<8x384xf32>
    %115 = vector.extract_strided_slice %113 {offsets = [8, 0], sizes = [1, 384], strides = [1, 1]} : vector<16x384xf32> to vector<1x384xf32>
    %cst_33 = arith.constant 5.000000e-01 : f32
    %116 = vector.broadcast %cst_33 : f32 to vector<1x384xf32>
    %117 = arith.cmpf ogt, %115, %116 : vector<1x384xf32>
    %118 = vector.extract_strided_slice %113 {offsets = [9, 0], sizes = [1, 384], strides = [1, 1]} : vector<16x384xf32> to vector<1x384xf32>
    %cst_34 = arith.constant 5.000000e-01 : f32
    %119 = vector.broadcast %cst_34 : f32 to vector<1x384xf32>
    %120 = arith.cmpf ogt, %118, %119 : vector<1x384xf32>
    %121 = vector.extract_strided_slice %113 {offsets = [10, 0], sizes = [1, 384], strides = [1, 1]} : vector<16x384xf32> to vector<1x384xf32>
    %cst_35 = arith.constant 5.000000e-01 : f32
    %122 = vector.broadcast %cst_35 : f32 to vector<1x384xf32>
    %123 = arith.cmpf ogt, %121, %122 : vector<1x384xf32>
    %cst_36 = arith.constant dense<0xFF800000> : vector<384xf32>
    %124 = vector.multi_reduction <maximumf>, %114, %cst_36 [0] : vector<8x384xf32> to vector<384xf32>
    %125 = vector.shape_cast %124 : vector<384xf32> to vector<1x384xf32>
    %126 = vector.broadcast %108 : vector<8x1xf32> to vector<8x384xf32>
    %127 = arith.cmpf oeq, %114, %126 : vector<8x384xf32>
    %128 = arith.extui %127 : vector<8x384xi1> to vector<8x384xi32>
    %129 = arith.sitofp %128 : vector<8x384xi32> to vector<8x384xf32>
    %cst_37 = arith.constant dense<0.000000e+00> : vector<384xf32>
    %130 = vector.multi_reduction <add>, %129, %cst_37 [0] : vector<8x384xf32> to vector<384xf32>
    %131 = vector.shape_cast %130 : vector<384xf32> to vector<1x384xf32>
    %132 = tpu.iota {dimensions = array<i32: 0>} : vector<8x384xi32>
    %133 = vector.broadcast %125 : vector<1x384xf32> to vector<8x384xf32>
    %134 = arith.cmpf oeq, %114, %133 : vector<8x384xf32>
    %c8_i32 = arith.constant 8 : i32
    %135 = vector.broadcast %c8_i32 : i32 to vector<8x384xi32>
    %136 = arith.select %134, %132, %135 : vector<8x384xi1>, vector<8x384xi32>
    %cst_38 = arith.constant dense<2147483647> : vector<384xi32>
    %137 = vector.multi_reduction <minsi>, %136, %cst_38 [0] : vector<8x384xi32> to vector<384xi32>
    %138 = vector.shape_cast %137 : vector<384xi32> to vector<1x384xi32>
    %139 = vector.broadcast %138 : vector<1x384xi32> to vector<8x384xi32>
    %140 = arith.cmpi eq, %132, %139 : vector<8x384xi32>
    %141 = arith.extui %140 : vector<8x384xi1> to vector<8x384xi32>
    %142 = arith.sitofp %141 : vector<8x384xi32> to vector<8x384xf32>
    %cst_39 = arith.constant -1.000000e+00 : f32
    %143 = vector.broadcast %cst_39 : f32 to vector<1x384xf32>
    %cst_40 = arith.constant 0.000000e+00 : f32
    %144 = vector.broadcast %cst_40 : f32 to vector<1x384xf32>
    %145 = arith.select %123, %143, %144 : vector<1x384xi1>, vector<1x384xf32>
    %cst_41 = arith.constant 0.000000e+00 : f32
    %146 = vector.broadcast %cst_41 : f32 to vector<1x384xf32>
    %147 = arith.cmpf ogt, %131, %146 : vector<1x384xf32>
    %cst_42 = arith.constant 1.000000e+00 : f32
    %148 = vector.broadcast %cst_42 : f32 to vector<1x384xf32>
    %149 = arith.select %147, %148, %145 : vector<1x384xi1>, vector<1x384xf32>
    %cst_43 = arith.constant 1.000000e+00 : f32
    %150 = vector.broadcast %cst_43 : f32 to vector<1x384xf32>
    %151 = arith.select %120, %150, %149 : vector<1x384xi1>, vector<1x384xf32>
    %cst_44 = arith.constant -1.000000e+00 : f32
    %152 = vector.broadcast %cst_44 : f32 to vector<1x384xf32>
    %153 = arith.select %117, %151, %152 : vector<1x384xi1>, vector<1x384xf32>
    %cst_45 = arith.constant dense<0.000000e+00> : vector<8x384xf32>
    %154 = tpu.matmul %109, %142, %cst_45 {dimension_numbers = #tpu.dot_dimension_numbers<[1], [0], [0], [1], [0, 0, 1, 1], [], []>} : vector<8x8xf32>, vector<8x384xf32>, vector<8x384xf32> -> vector<8x384xf32>
    %c0_46 = arith.constant 0 : index
    %155 = arith.index_cast %111 : i32 to index
    %156 = vector.load %arg2[%c0_46, %155] : memref<16x384xf32, #tpu.memory_space<vmem>>, vector<16x384xf32>
    %157 = vector.extract_strided_slice %156 {offsets = [6, 0], sizes = [1, 384], strides = [1, 1]} : vector<16x384xf32> to vector<1x384xf32>
    %158 = vector.extract_strided_slice %156 {offsets = [7, 0], sizes = [1, 384], strides = [1, 1]} : vector<16x384xf32> to vector<1x384xf32>
    %159 = vector.extract_strided_slice %156 {offsets = [8, 0], sizes = [1, 384], strides = [1, 1]} : vector<16x384xf32> to vector<1x384xf32>
    %160 = vector.extract_strided_slice %156 {offsets = [9, 0], sizes = [1, 384], strides = [1, 1]} : vector<16x384xf32> to vector<1x384xf32>
    %161 = vector.extract_strided_slice %156 {offsets = [10, 0], sizes = [1, 384], strides = [1, 1]} : vector<16x384xf32> to vector<1x384xf32>
    %162 = vector.extract_strided_slice %156 {offsets = [11, 0], sizes = [1, 384], strides = [1, 1]} : vector<16x384xf32> to vector<1x384xf32>
    %163 = vector.extract_strided_slice %154 {offsets = [0, 0], sizes = [1, 384], strides = [1, 1]} : vector<8x384xf32> to vector<1x384xf32>
    %164 = arith.subf %163, %157 : vector<1x384xf32>
    %165 = arith.mulf %164, %159 : vector<1x384xf32>
    %cst_47 = arith.constant 0.000000e+00 : f32
    %166 = vector.broadcast %cst_47 : f32 to vector<1x384xf32>
    %167 = arith.select %117, %165, %166 : vector<1x384xi1>, vector<1x384xf32>
    %168 = vector.extract_strided_slice %154 {offsets = [1, 0], sizes = [1, 384], strides = [1, 1]} : vector<8x384xf32> to vector<1x384xf32>
    %169 = arith.subf %168, %158 : vector<1x384xf32>
    %170 = arith.mulf %169, %160 : vector<1x384xf32>
    %cst_48 = arith.constant 0.000000e+00 : f32
    %171 = vector.broadcast %cst_48 : f32 to vector<1x384xf32>
    %172 = arith.select %117, %170, %171 : vector<1x384xi1>, vector<1x384xf32>
    %173 = vector.extract_strided_slice %154 {offsets = [2, 0], sizes = [1, 384], strides = [1, 1]} : vector<8x384xf32> to vector<1x384xf32>
    %174 = arith.subf %173, %161 : vector<1x384xf32>
    %cst_49 = arith.constant 0.000000e+00 : f32
    %175 = vector.broadcast %cst_49 : f32 to vector<1x384xf32>
    %176 = arith.select %117, %174, %175 : vector<1x384xi1>, vector<1x384xf32>
    %177 = vector.extract_strided_slice %154 {offsets = [3, 0], sizes = [1, 384], strides = [1, 1]} : vector<8x384xf32> to vector<1x384xf32>
    %178 = arith.subf %177, %162 : vector<1x384xf32>
    %cst_50 = arith.constant 0.000000e+00 : f32
    %179 = vector.broadcast %cst_50 : f32 to vector<1x384xf32>
    %180 = arith.select %117, %178, %179 : vector<1x384xi1>, vector<1x384xf32>
    %cst_51 = arith.constant 0.000000e+00 : f32
    %181 = vector.broadcast %cst_51 : f32 to vector<3x384xf32>
    %182 = tpu.concatenate %153, %167, %172, %176, %180, %181 in 0 : vector<1x384xf32>, vector<1x384xf32>, vector<1x384xf32>, vector<1x384xf32>, vector<1x384xf32>, vector<3x384xf32> -> vector<8x384xf32>
    %c0_52 = arith.constant 0 : index
    %183 = arith.index_cast %111 : i32 to index
    %184 = vector.load %arg5[%c0_52, %183] : memref<8x384xf32, #tpu.memory_space<vmem>>, vector<8x384xf32>
    tpu.vector_store %arg5[%c0_52, %183], %182 {strides = array<i32>} : memref<8x384xf32, #tpu.memory_space<vmem>>, vector<8x384xf32>,
    %c1_i32_53 = arith.constant 1 : i32
    return
  }
  func.func @transform_0(%arg0: i32, %arg1: memref<2xf32, #tpu.memory_space<smem>>) -> (i32, i32) {
    %c0_i32 = arith.constant 0 : i32
    %c0_i32_0 = arith.constant 0 : i32
    %c0_i32_1 = arith.constant 0 : i32
    return %c0_i32, %c0_i32_0 : i32, i32
  }
  func.func @transform_1(%arg0: i32, %arg1: memref<2xf32, #tpu.memory_space<smem>>) -> (i32, i32) {
    %c0_i32 = arith.constant 0 : i32
    %c0_i32_0 = arith.constant 0 : i32
    return %arg0, %c0_i32 : i32, i32
  }
  func.func @transform_2(%arg0: i32, %arg1: memref<2xf32, #tpu.memory_space<smem>>) -> (i32, i32) {
    %c0_i32 = arith.constant 0 : i32
    %c0_i32_0 = arith.constant 0 : i32
    return %arg0, %c0_i32 : i32, i32
  }
  func.func @transform_3(%arg0: i32, %arg1: memref<2xf32, #tpu.memory_space<smem>>) -> (i32, i32) {
    %c0_i32 = arith.constant 0 : i32
    %c0_i32_0 = arith.constant 0 : i32
    return %arg0, %c0_i32 : i32, i32
  }
}

</mosaic_0001>

<bundles_post_ra>
// kernel: tpu_custom_call.1
= control target key start
LH: loop header
LB: loop body
LE: loop exit
PB: predicated region body
PF: predicated region fallthrough
CT: control target
= control target key end

     0   :  { %s1699_s0 = inlined_call_operand.vmem [shape: f32[2], index: 0, kind: input, shape index: {}]   ;;  %s1700_s1 = inlined_call_operand.vmem [shape: f32[16,384], index: 1, kind: input, shape index: {}]   ;;  %s1701_s2 = inlined_call_operand.vmem [shape: f32[16,8], index: 2, kind: input, shape index: {}]   ;;  %s1702_s3 = inlined_call_operand.vmem [shape: f32[16,8], index: 3, kind: input, shape index: {}]   ;;  %s1703_s4 = inlined_call_operand.hbm [shape: f32[16,384], index: 4, kind: output, shape index: {}]  }
   0x1   :  { %s9_s17 = sshll.u32 %s1699_s0, 4  ;;  %s10_s17 = int_to_ptr.vmem [resolvable:$true] %s9_s17 }
   0x2   :  { %s1074_s18 = scalar_lea.vmem %s10_s17, 16  ;;  %p1079_p1 = scmp.lt.s32.totalorder %s10_s17, %s10_s17 }
   0x3   :  { %p1075_p0 = scmp.ne.s32.totalorder %s10_s17, %s1074_s18  ;;  %p1080_p2 = scmp.lt.s32.totalorder %s1074_s18, %s1074_s18 }
   0x5   :  { %p1081_p3 = por %p1080_p2, %p1079_p1 }
   0x7   :  { %p1082_p4 = pnand %p1081_p3, %p1075_p0 }
   0x9   :  { %1085 = shalt.err (!%p1082_p4)  }
   0xa   :  { %s1152_s19 = smov [#allocation4]  }
   0xb   :  { %12 = dma.vmem_to_smem %s10_s17, 16, %s1152_s19, [#allocation3] }
   0xc   :  { %1130 = dma.done.wait [#allocation3], 16 }
   0xd   :  { %1131 = vsyncadd [#allocation3], 4294967280 }
   0xe   :  { %14 = sfence }
   0xf   :  { %15 = vsyncpa [#allocation6], 0 }
  0x10   :  { %17 = vsyncpa [#allocation6 + $0x1], 0  ;;  %s1191_s20 = smov 0   ;;  %s1193_s21 = smov 0  }
  0x11   :  { %s1195_s0 = smov 0   ;;  %s1197_s22 = smov 0  }
  0x12 LB: > { %s1212_s23 = sadd.s32 4294967295, %s1150_s22   ;;  %s983_s24 = sadd.s32 4294967294, %s1150_s22   ;;  %s1150_s22 = sphi %s1197_s22, %s1766_s22   ;;  %s1146_s0 = sphi %s1195_s0, %s1765_s0   ;;  %s1142_s21 = sphi %s1193_s21, %s1764_s21   ;;  %s1138_s20 = sphi %s1191_s20, %s1763_s20  }
  0x13   : > { %s1216_s25 = sadd.s32 1, %s1150_s22   ;;  %s103_s26 = sadd.s32 1, %s1146_s0 }
  0x14   : > { %s100_s27 = ssub.s32 %s1150_s22, %s1216_s25  ;;  %p113_p5 = scmp.ne.s32.totalorder %s1146_s0, %s1142_s21 }
  0x15   : > { %p101_p6 = scmp.eq.s32.totalorder %s100_s27, 0  ;;  %p114_p7 = scmp.eq.s32.totalorder %s1212_s23, 1 }
  0x16   : > { %p119_p8 = scmp.ne.s32.totalorder %s1142_s21, %s1138_s20  ;;  %p120_p9 = scmp.eq.s32.totalorder %s983_s24, 1 }
  0x17   : > { %s1227_s28 = scalar_select %p101_p6, %s1146_s0, %s103_s26  }
  0x18   : > { %p1229_p10 = por %p114_p7, %p113_p5  ;;  %p1233_p11 = por %p120_p9, %p119_p8 }
  0x19   : > { %p986_p12 = scmp.ge.s32.totalorder %s1150_s22, 1  ;;  %p155_p13 = scmp.lt.s32.totalorder %s1150_s22, 3 }
  0x1b   : > { %p156_p0 = pnand %p986_p12, %p155_p13 }
  0x1c   : > { %p182_p1 = scmp.lt.s32.totalorder (!%p156_p0), %s1212_s23, 1  ;;  %v1153_v0 = vmov (!%p156_p0), 3   ;;  %v1154_v1 = vmov (!%p156_p0), 2   ;;  %v1155_v3 = vmov (!%p156_p0), 1   ;;  %v1156_v4 = vmov (!%p156_p0), 0   ;;  %s989_s10 = sld [smem:[#allocation4 + $0x1]] (!%p156_p0) }
  0x1d   : > { %159 = sbr.rel (%p156_p0) target bundleno = 480 (0x1e0), region = 32  ;;  %1064 = vset.pattern.permute.xlu1 (!%p156_p0), %v1153_v0  ;;  %1062 = vset.pattern.permute.xlu0 (!%p156_p0), %v1154_v1  ;;  %v1157_v6 = vmov (!%p156_p0), 4   ;;  %v1158_v7 = vmov (!%p156_p0), 5   ;;  %v1159_v8 = vmov (!%p156_p0), 0.0   ;;  %vm1160_vm1 = vmmov (!%p156_p0), 0   ;;  %s190_s11 = sld [smem:[#allocation4]] (!%p156_p0) }
  0x1e   : > { %1006 = vmatprep.subr.mxu1 (!%p156_p0), %v1159_v8  ;;  %704 = vmatprep.mubr.f32.mxu0 (!%p156_p0), %v1159_v8  ;;  %v1257_v9 = vld [vmem:[%s1700_s1] sm:$0xff] (!%p156_p0)  ;;  %v1263_v11 = vld [vmem:[%s1700_s1 + $0x8] sm:$0xff] (!%p156_p0)  ;;  %v1269_v12 = vld [vmem:[%s1700_s1 + $0x10] sm:$0xff] (!%p156_p0)  ;;  %v259_v34 = vlaneseq (!%p156_p0)  ;;  %v1735_v51 = vmov (!%p156_p0), 0  ;;  %v1737_v52 = vmov (!%p156_p0), 0  ;;  %v1741_v41 = vmov (!%p156_p0), 0 }
  0x1f   : > { %1008 = vmatprep.mubr.msk.f32.mxu1 (!%p156_p0), %vm1160_vm1, %v1159_v8  ;;  %vm197_vm2 = vcmp.ge.f32.partialorder (!%p156_p0), %v1257_v9, 0.0  ;;  %vm198_vm3 = vcmp.ge.f32.partialorder (!%p156_p0), %v1263_v11, 0.0  ;;  %vm199_vm5 = vcmp.ge.f32.partialorder (!%p156_p0), %v1269_v12, 0.0  ;;  %vm244_vm10 = vcmp.gt.f32.partialorder (!%p156_p0), %v1257_v9, 0.5  ;;  %s1162_s18 = smov (!%p156_p0), [#allocation5]  }
  0x20   : > { %v200_v13 = vsel (!%p156_p0), %vm197_vm2, 1, %v1156_v4  ;;  %v201_v15 = vsel (!%p156_p0), %vm198_vm3, 1, %v1156_v4  ;;  %v202_v18 = vsel (!%p156_p0), %vm199_vm5, 1, %v1156_v4  ;;  %vm245_vm14 = vcmp.gt.f32.partialorder (!%p156_p0), %v1263_v11, 0.5  ;;  %s1090_s19 = sshll.u32 (!%p156_p0), %s1162_s18, 4  ;;  %s1091_s19 = int_to_ptr.vmem [resolvable:$false] %s1090_s19 }
  0x21   : > { %v203_v16 = vrot.slane (!%p156_p0), %v200_v13, 1  ;;  %v204_v19 = vrot.slane (!%p156_p0), %v201_v15, 1  ;;  %v205_v23 = vrot.slane (!%p156_p0), %v202_v18, 1  ;;  %v247_v28 = vsel (!%p156_p0), %vm244_vm10, 1, %v1156_v4 }
  0x22   : > { %v212_v10 = vstv (!%p156_p0), %s989_s10  ;;  %vm246_vm1 = vcmp.gt.f32.partialorder (!%p156_p0), %v1269_v12, 0.5  ;;  %v248_v37 = vsel (!%p156_p0), %vm245_vm14, 1, %v1156_v4  ;;  %v250_v38 = vrot.slane (!%p156_p0), %v247_v28, 4 }
  0x23   : > { %vm213_vm4 = vcmp.lt.f32.partialorder (!%p156_p0), %v1257_v9, %v212_v10  ;;  %v228_v14 = vstv (!%p156_p0), %s190_s11  ;;  %vm214_vm6 = vcmp.lt.f32.partialorder (!%p156_p0), %v1263_v11, %v212_v10  ;;  %vm215_vm8 = vcmp.lt.f32.partialorder (!%p156_p0), %v1269_v12, %v212_v10  ;;  %s1012_s11 = smul.u32 (!%p156_p0), 384, %s1212_s23 }
  0x24   : > { %s1241_s5 = scalar_select %p182_p1, %s1212_s23, 1  ;;  %v216_v17 = vsel %vm213_vm4, 1, %v1156_v4  ;;  %vm229_vm7 = vcmp.lt.f32.partialorder %v1257_v9, %v228_v14  ;;  %v217_v20 = vsel %vm214_vm6, 1, %v1156_v4  ;;  %vm230_vm9 = vcmp.lt.f32.partialorder %v1263_v11, %v228_v14 }
  0x25   : > { %v219_v21 = vrot.slane %v216_v17, 2  ;;  %v232_v22 = vsel %vm229_vm7, 1, %v1156_v4  ;;  %vm206_vm11 = vcmp.ne.s32.totalorder %v203_v16, 0  ;;  %v218_v24 = vsel %vm215_vm8, 1, %v1156_v4  ;;  %s1654_s16 = scalar_lea.hbm %s1703_s4, %s1012_s11 }
  0x26   : > { %s987_s6 = sshll.u32 %s1241_s5, 3  ;;  %vm231_vm12 = vcmp.lt.f32.partialorder %v1269_v12, %v228_v14  ;;  %v220_v25 = vrot.slane %v217_v20, 2  ;;  %v233_v26 = vsel %vm230_vm9, 1, %v1156_v4  ;;  %vm207_vm13 = vcmp.ne.s32.totalorder %v204_v19, 0  ;;  %vm1297_vm15 = vmand %vm197_vm2, %vm206_vm11 }
  0x27   : > { %s185_s9 = scalar_lea.vmem %s1701_s2, %s987_s6  ;;  %v235_v27 = vrot.slane %v232_v22, 3  ;;  %v221_v30 = vrot.slane %v218_v24, 2  ;;  %v234_v32 = vsel %vm231_vm12, 1, %v1156_v4  ;;  %vm208_vm4 = vcmp.ne.s32.totalorder %v205_v23, 0  ;;  %vm1309_vm6 = vmand %vm198_vm3, %vm207_vm13  ;;  %s189_s24 = scalar_lea.vmem %s1702_s3, %s987_s6 }
  0x28   : > { %v192_v2 = vld [vmem:[%s185_s9] sm:$0xff]  ;;  %v236_v33 = vrot.slane %v233_v26, 3  ;;  %vm1313_vm2 = vcmp.ne.s32.totalorder %v220_v25, 0  ;;  %v237_v39 = vrot.slane %v234_v32, 3  ;;  %v249_v40 = vsel %vm246_vm1, 1, %v1156_v4  ;;  %vm1325_vm3 = vmand %vm199_vm5, %vm208_vm4  ;;  %s179_s9 = sand.u32 1, %s1142_s21  }
  0x29   : > { %320 = vperm.xlu1 %1064, %v192_v2   ;;  %273 = vperm.xlu0 %1062, %v192_v2   ;;  %vm193_vm0 = vcmp.gt.f32.partialorder %v192_v2, 0.5  ;;  %vm238_vm8 = vcmp.ne.s32.totalorder %v235_v27, 0  ;;  %vm1329_vm9 = vcmp.ne.s32.totalorder %v221_v30, 0  ;;  %vm226_vm10 = vmand %vm1309_vm6, %vm1313_vm2  ;;  %v251_v43 = vrot.slane %v248_v37, 4  ;;  %s1011_s10 = smul.u32 24, %s179_s9  ;;  %s898_s23 = scalar_lea.sflag [#allocation6], %s179_s9 }
  0x2a   : > { %v385_v5 = vsel %vm193_vm0, 1, %v1156_v4  ;;  %vm1301_vm0 = vcmp.ne.s32.totalorder %v219_v21, 0  ;;  %vm239_vm11 = vcmp.ne.s32.totalorder %v236_v33, 0  ;;  %v1337_v44 = vshrl.u32 %v259_v34, 7  ;;  %vm227_vm13 = vmand %vm1325_vm3, %vm1329_vm9 }
  0x2b   : > { %vm225_vm7 = vmand %vm1297_vm15, %vm1301_vm0  ;;  %v252_v46 = vrot.slane %v249_v40, 4  ;;  %vm1343_vm5 = vcmp.ne.s32.totalorder %v250_v38, 0  ;;  %vm240_vm14 = vcmp.ne.s32.totalorder %v237_v39, 0  ;;  %vm1355_vm0 = vcmp.ne.s32.totalorder %v251_v43, 0  ;;  %s181_s12 = scalar_lea.vmem [#allocation5], %s1011_s10 }
  0x2c   : > { %vm1339_vm12 = vmand %vm225_vm7, %vm238_vm8  ;;  %v309_v50 = vsub.s32 3, %v1337_v44  ;;  %v261_v53 = vsub.s32 2, %v1337_v44  ;;  %v328_v55 = vsub.s32 1, %v1337_v44  ;;  %v281_v56 = vsub.s32 0, %v1337_v44  ;;  %s912_s13 = sshll.u32 %s181_s12, 4  ;;  %s1656_s13 = int_to_ptr.vmem [resolvable:$true] %s912_s13 }
  0x2d   : > { %1065 = vset.pattern.permute.xlu1 %v1155_v3  ;;  %1063 = vset.pattern.permute.xlu0 %v1156_v4  ;;  %vm1351_vm15 = vmand %vm226_vm10, %vm239_vm11  ;;  %vm1368_vm6 = vcmp.ne.s32.totalorder %v252_v46, 0  ;;  %v359_v58 = vsub.s32 5, %v1337_v44  ;;  %v1739_v20 = vmov 0  ;;  %v1743_v42 = vmov 0  ;;  %s1086_s17 = scalar_lea.vmem %s1656_s13, 384  ;;  %p1093_p5 = scmp.lt.s32.totalorder %s1656_s13, %s1091_s19 }
  0x2e   : > { %339 = vperm.xlu1 %1065, %v192_v2   ;;  %292 = vperm.xlu0 %1063, %v192_v2   ;;  %vm1706_vm1 = vmand %vm1339_vm12, %vm1343_vm5  ;;  %v1738_v52 = vsel %vm1368_vm6, 4294967295, %v1737_v52  ;;  %v310_v57 = vrot.slane %v1257_v9, %v309_v50  ;;  %v314_v59 = vrot.slane %v1263_v11, %v309_v50  ;;  %v318_v60 = vrot.slane %v1269_v12, %v309_v50  ;;  %p1087_p2 = scmp.ne.s32.totalorder %s1656_s13, %s1086_s17 }
  0x2f   : > { %vm1364_vm4 = vmand %vm227_vm13, %vm240_vm14  ;;  %v393_v54 = vsel %vm1706_vm1, 1, %v1156_v4  ;;  %v262_v62 = vrot.slane %v1257_v9, %v261_v53  ;;  %v266_v1 = vrot.slane %v1263_v11, %v261_v53  ;;  %v337_v10 = vrot.slane %v1269_v12, %v328_v55 }
  0x30   : > { %v1736_v51 = vsel %vm1364_vm4, 4294967295, %v1735_v51  ;;  %vm1705_vm2 = vmand %vm1351_vm15, %vm1355_vm0  ;;  %v399_v0 = vrot.slane %v393_v54, %v281_v56  ;;  %v282_v13 = vrot.slane %v1257_v9, %v281_v56  ;;  %v286_v14 = vrot.slane %v1263_v11, %v281_v56  ;;  %p1088_p3 = pnand %p1087_p2, %p1229_p10 }
  0x31   : > { %vm1704_vm7 = vmand %vm1364_vm4, %vm1368_vm6  ;;  %v394_v3 = vsel %vm1705_vm2, 1, %v1156_v4  ;;  %v290_v15 = vrot.slane %v1269_v12, %v281_v56  ;;  %v360_v16 = vrot.slane %v1257_v9, %v359_v58  ;;  %v364_v17 = vrot.slane %v1263_v11, %v359_v58 }
  0x32   : > { %1066 = vset.pattern.permute.xlu1 %v1157_v6  ;;  %1067 = vset.pattern.permute.xlu0 %v1158_v7  ;;  %v329_v6 = vrot.slane %v1257_v9, %v328_v55  ;;  %v333_v7 = vrot.slane %v1263_v11, %v328_v55  ;;  %v368_v18 = vrot.slane %v1269_v12, %v359_v58  ;;  %vm1417_vm8 = vcmp.eq.s32.totalorder %v399_v0, 1  ;;  %p1089_p4 = pneg %p1088_p3 }
  0x33   : > { %370 = vperm.xlu1 %1066, %v192_v2   ;;  %387 = vperm.xlu0 %1067, %v385_v5   ;;  %v270_v2 = vrot.slane %v1269_v12, %v261_v53  ;;  %v395_v5 = vsel %vm1704_vm7, 1, %v1156_v4  ;;  %v403_v19 = vrot.slane %v394_v3, %v281_v56  ;;  %v1740_v20 = vsel %vm1417_vm8, 4294967295, %v1739_v20 }
  0x34   : > { %v407_v4 = vrot.slane %v395_v5, %v281_v56 }
  0x35   : > { %vm1421_vm3 = vcmp.eq.s32.totalorder %v403_v19, 1 }
  0x36   : > { %v1742_v41 = vsel %vm1421_vm3, 4294967295, %v1741_v41  ;;  %vm1425_vm9 = vcmp.eq.s32.totalorder %v407_v4, 1 }
  0x37   : > { %v1744_v42 = vsel %vm1425_vm9, 4294967295, %v1743_v42 }
  0xa8   : > { %v321_v61 = vpop.permute.xlu1 %320  ;;  %v274_v63 = vpop.permute.xlu0 %273 }
  0xa9   : > { %v323_v21 = vmin.f32 %v310_v57, %v321_v61  ;;  %v324_v22 = vmin.f32 %v314_v59, %v321_v61  ;;  %v325_v23 = vmin.f32 %v318_v60, %v321_v61  ;;  %v276_v24 = vmin.f32 %v262_v62, %v274_v63 }
  0xaa   : > { %v277_v31 = vmin.f32 %v266_v1, %v274_v63  ;;  %v278_v32 = vmin.f32 %v270_v2, %v274_v63 }
  0xad   : > { %v340_v25 = vpop.permute.xlu1 %339  ;;  %v293_v26 = vpop.permute.xlu0 %292 }
  0xae   : > { %v342_v27 = vmax.f32 %v329_v6, %v340_v25  ;;  %v343_v28 = vmax.f32 %v333_v7, %v340_v25  ;;  %v344_v29 = vmax.f32 %v337_v10, %v340_v25  ;;  %v295_v30 = vmax.f32 %v282_v13, %v293_v26 }
  0xaf   : > { %v296_v33 = vmax.f32 %v286_v14, %v293_v26  ;;  %v297_v34 = vmax.f32 %v290_v15, %v293_v26 }
  0xb0   : > { %v345_v35 = vsub.f32 %v323_v21, %v342_v27  ;;  %v346_v36 = vsub.f32 %v324_v22, %v343_v28  ;;  %v347_v37 = vsub.f32 %v325_v23, %v344_v29  ;;  %v298_v38 = vsub.f32 %v276_v24, %v295_v30 }
  0xb1   : > { %v299_v39 = vsub.f32 %v277_v31, %v296_v33  ;;  %v300_v40 = vsub.f32 %v278_v32, %v297_v34 }
  0xb2   : > { %v348_v43 = vadd.f32 1.0, %v345_v35  ;;  %v349_v46 = vadd.f32 1.0, %v346_v36  ;;  %v350_v50 = vadd.f32 1.0, %v347_v37  ;;  %v301_v53 = vadd.f32 1.0, %v298_v38  ;;  %v371_v54 = vpop.permute.xlu1 %370  ;;  %v1429_v55 = vpop.permute.xlu0 %387 }
  0xb3   : > { %v302_v56 = vadd.f32 1.0, %v299_v39  ;;  %v303_v57 = vadd.f32 1.0, %v300_v40  ;;  %v373_v58 = vadd.f32 %v371_v54, %v360_v16  ;;  %v374_v59 = vadd.f32 %v371_v54, %v364_v17 }
  0xb4   : > { %v351_v60 = vmax.f32 %v348_v43, 0.0  ;;  %v352_v61 = vmax.f32 %v349_v46, 0.0  ;;  %v353_v62 = vmax.f32 %v350_v50, 0.0  ;;  %v304_v63 = vmax.f32 %v301_v53, 0.0 }
  0xb5   : > { %v305_v0 = vmax.f32 %v302_v56, 0.0  ;;  %v306_v1 = vmax.f32 %v303_v57, 0.0  ;;  %v375_v2 = vadd.f32 %v371_v54, %v368_v18  ;;  %vm1707_vm10 = vcmp.eq.s32.totalorder %v1429_v55, 1 }
  0xb6   : > { %v354_v3 = vmul.f32 %v351_v60, %v304_v63  ;;  %vm1436_vm11 = vmand %vm1707_vm10, %vm1417_vm8 }
  0xb7   : > { %v355_v6 = vmul.f32 %v352_v61, %v305_v0  ;;  %v1440_v7 = vmul.f32 %v353_v62, %v306_v1  ;;  %vm1446_vm13 = vmand %vm1707_vm10, %vm1421_vm3 }
  0xb8   : > { %v376_v13 = vsub.f32 %v373_v58, %v354_v3  ;;  %vm1454_vm14 = vmand %vm1707_vm10, %vm1425_vm9 }
  0xb9   : > { %v377_v15 = vsub.f32 %v374_v59, %v355_v6  ;;  %v378_v16 = vsub.f32 %v375_v2, %v1440_v7  ;;  %vm1751_vm9 = vmand %vm1339_vm12, %vm1343_vm5  ;;  %vm1754_vm12 = vnez %v1738_v52 }
  0xba   : > { %1068 = vrcp.f32 %v376_v13  ;;  %v417_v17 = vmul.f32 0.7, %v376_v13  ;;  %v447_v18 = vmul.f32 0.3, %v376_v13  ;;  %v477_v26 = vsel %vm1751_vm9, 1.0, %v1159_v8 }
  0xbb   : > { %1070 = vrcp.f32 %v377_v15  ;;  %v418_v19 = vmul.f32 0.7, %v377_v15  ;;  %v419_v4 = vmul.f32 0.7, %v378_v16  ;;  %v448_v21 = vmul.f32 0.3, %v377_v15 }
  0xbc   : > { %1072 = vrcp.f32 %v378_v16  ;;  %v449_v22 = vmul.f32 0.3, %v378_v16  ;;  %vm420_vm7 = vcmp.ge.f32.partialorder %v354_v3, %v417_v17  ;;  %vm450_vm2 = vcmp.ge.f32.partialorder %v354_v3, %v447_v18 }
  0xbd   : > { %vm421_vm1 = vcmp.ge.f32.partialorder %v355_v6, %v418_v19  ;;  %vm422_vm10 = vcmp.ge.f32.partialorder %v1440_v7, %v419_v4  ;;  %vm423_vm3 = vmand %vm1436_vm11, %vm420_vm7  ;;  %vm1753_vm7 = vnez %v1736_v51 }
  0xbe   : > { %vm452_vm8 = vcmp.ge.f32.partialorder %v1440_v7, %v449_v22  ;;  %vm424_vm6 = vmand %vm1446_vm13, %vm421_vm1  ;;  %v426_v23 = vsel %vm423_vm3, 1.0, %v1159_v8  ;;  %vm1756_vm3 = vcmp.ge.f32.partialorder %v355_v6, %v448_v21 }
  0xbf   : > { %vm425_vm4 = vmand %vm1454_vm14, %vm422_vm10  ;;  %v427_v24 = vsel %vm424_vm6, 1.0, %v1159_v8  ;;  %v429_v25 = vrot.slane %v426_v23, 4  ;;  %vm1759_vm10 = vnez %v1740_v20 }
  0xc0   : > { %vm1752_vm1 = vmand %vm1351_vm15, %vm1355_vm0  ;;  %v428_v28 = vsel %vm425_vm4, 1.0, %v1159_v8  ;;  %v435_v29 = vrot.slane %v427_v24, 4  ;;  %vm480_vm0 = vcmask 1040384  }
  0xc1   : > { %v478_v27 = vsel %vm1752_vm1, 1.0, %v1159_v8  ;;  %vm453_vm6 = vmand %vm1436_vm11, %vm450_vm2  ;;  %v430_v47 = vmax.f32 %v426_v23, %v429_v25  ;;  %v441_v48 = vrot.slane %v428_v28, 4  ;;  %vm484_vm2 = vcmask 1041408  }
  0xc2   : > { %vm1755_vm5 = vmand %vm1753_vm7, %vm1754_vm12  ;;  %v456_v49 = vsel %vm453_vm6, 1.0, %v1159_v8  ;;  %v436_v30 = vmax.f32 %v427_v24, %v435_v29 }
  0xc3   : > { %v479_v45 = vsel %vm1755_vm5, 1.0, %v1159_v8  ;;  %vm454_vm15 = vmand %vm1446_vm13, %vm1756_vm3  ;;  %v459_v52 = vrot.slane %v456_v49, 4  ;;  %v431_v31 = vrot.slane %v430_v47, 2  ;;  %v442_v32 = vmax.f32 %v428_v28, %v441_v48 }
  0xc4   : > { %vm455_vm4 = vmand %vm1454_vm14, %vm452_vm8  ;;  %v457_v51 = vsel %vm454_vm15, 1.0, %v1159_v8  ;;  %v1069_v35 = vpop.eup %1068  ;;  %v437_v36 = vrot.slane %v436_v30, 2  ;;  %vm1757_vm8 = vcmp.eq.s32.totalorder %v1429_v55, 1  ;;  %vm1761_vm13 = vnez %v1742_v41 }
  0xc5   : > { %v458_v33 = vsel %vm455_vm4, 1.0, %v1159_v8  ;;  %v465_v34 = vrot.slane %v457_v51, 4  ;;  %v460_v37 = vmax.f32 %v456_v49, %v459_v52  ;;  %v1071_v39 = vpop.eup %1070  ;;  %v382_v40 = vmul.f32 %v1069_v35, %v354_v3  ;;  %vm1758_vm9 = vmmov %vm1757_vm8 }
  0xc6   : > { %v471_v38 = vrot.slane %v458_v33, 4  ;;  %v432_v43 = vmax.f32 %v430_v47, %v431_v31  ;;  %v443_v46 = vrot.slane %v442_v32, 2  ;;  %v1073_v53 = vpop.eup %1072  ;;  %v383_v54 = vmul.f32 %v1071_v39, %v355_v6  ;;  %vm1760_vm11 = vmmov %vm1757_vm8 }
  0xc7   : > { %v466_v50 = vmax.f32 %v457_v51, %v465_v34  ;;  %v438_v56 = vmax.f32 %v436_v30, %v437_v36  ;;  %v461_v57 = vrot.slane %v460_v37, 2  ;;  %v390_v59 = vsel %vm1757_vm8, %v382_v40, 0.0 }
  0xc8   : > { %v472_v58 = vmax.f32 %v458_v33, %v471_v38  ;;  %v433_v60 = vrot.slane %v432_v43, 1  ;;  %v444_v61 = vmax.f32 %v442_v32, %v443_v46  ;;  %v391_v63 = vsel %vm1758_vm9, %v383_v54, 0.0 }
  0xc9   : > { %v467_v62 = vrot.slane %v466_v50, 2  ;;  %v439_v0 = vrot.slane %v438_v56, 1  ;;  %v462_v1 = vmax.f32 %v460_v37, %v461_v57  ;;  %v384_v6 = vmul.f32 %v1073_v53, %v1440_v7 }
  0xca   : > { %v473_v2 = vrot.slane %v472_v58, 2  ;;  %v434_v3 = vmax.f32 %v432_v43, %v433_v60  ;;  %v445_v5 = vrot.slane %v444_v61, 1  ;;  %v1508_v16 = vsel %vm1759_vm10, %v390_v59, -1.0 }
  0xcb   : > { %v468_v10 = vmax.f32 %v466_v50, %v467_v62  ;;  %v440_v13 = vmax.f32 %v438_v56, %v439_v0  ;;  %v463_v14 = vrot.slane %v462_v1, 1  ;;  %v392_v4 = vsel %vm1760_vm11, %v384_v6, 0.0 }
  0xcc   : > { %v474_v15 = vmax.f32 %v472_v58, %v473_v2  ;;  %v446_v17 = vmax.f32 %v444_v61, %v445_v5  ;;  %v481_v19 = vsel %vm480_vm0, %v477_v26, %v434_v3  ;;  %v1516_v7 = vsel %vm1761_vm13, %v391_v63, -1.0 }
  0xcd   : > { %v469_v18 = vrot.slane %v468_v10, 1  ;;  %v464_v21 = vmax.f32 %v462_v1, %v463_v14  ;;  %v482_v23 = vsel %vm480_vm0, %v478_v27, %v440_v13  ;;  %vm1762_vm14 = vnez %v1744_v42  ;;  %v504_v14 = vld [vmem:[%s189_s24] sm:$0xff]  ;;  %s1092_s24 = scalar_lea.vmem %s1091_s19, 768 }
  0xce   : > { %v475_v22 = vrot.slane %v474_v15, 1  ;;  %v483_v20 = vsel %vm480_vm0, %v479_v45, %v446_v17  ;;  %v1521_v25 = vsel %vm1762_vm14, %v392_v4, -1.0  ;;  %v498_v26 = vmax.f32 %v1508_v16, %v1516_v7  ;;  %p1094_p6 = scmp.lt.s32.totalorder %s1092_s24, %s1086_s17 }
  0xcf   : > { %v470_v24 = vmax.f32 %v468_v10, %v469_v18  ;;  %v1526_v28 = vsel %vm484_vm2, %v481_v19, %v464_v21  ;;  %v514_v27 = vrot.slane %v1508_v16, 4  ;;  %v520_v41 = vrot.slane %v1516_v7, 4 }
  0xd0   : > { %v476_v55 = vmax.f32 %v474_v15, %v475_v22  ;;  %v499_v45 = vmax.f32 %v498_v26, %v1521_v25  ;;  %v526_v42 = vrot.slane %v1521_v25, 4  ;;  %vm636_vm14 = vcmask 64512   ;;  %p1095_p7 = por %p1094_p6, %p1093_p5 }
  0xd1   : > { %v1531_v29 = vsel %vm484_vm2, %v482_v23, %v470_v24  ;;  %v515_v48 = vmax.f32 %v1508_v16, %v514_v27  ;;  %v521_v30 = vmax.f32 %v1516_v7, %v520_v41  ;;  %v1161_v15 = vmov 1.0  }
  0xd2   : > { %v1536_v47 = vsel %vm484_vm2, %v483_v20, %v476_v55  ;;  %v527_v49 = vmax.f32 %v1521_v25, %v526_v42  ;;  %500 = vmax.xlane.f32.xlu1 %v499_v45  ;;  %p1096_p8 = pnand %p1095_p7, %p1089_p4 }
  0xd3   : > { %v516_v51 = vrot.slane %v515_v48, 2  ;;  %v522_v31 = vrot.slane %v521_v30, 2 }
  0xd4   : > { %v528_v52 = vrot.slane %v527_v49, 2 }
  0xd5   : > { %v517_v32 = vmax.f32 %v515_v48, %v516_v51  ;;  %v523_v33 = vmax.f32 %v521_v30, %v522_v31 }
  0xd6   : > { %v529_v34 = vmax.f32 %v527_v49, %v528_v52 }
  0xd7   : > { %v518_v35 = vrot.slane %v517_v32, 1  ;;  %v524_v36 = vrot.slane %v523_v33, 1 }
  0xd8   : > { %v530_v37 = vrot.slane %v529_v34, 1 }
  0xd9   : > { %v519_v38 = vmax.f32 %v517_v32, %v518_v35  ;;  %v525_v39 = vmax.f32 %v523_v33, %v524_v36 }
  0xda   : > { %v531_v40 = vmax.f32 %v529_v34, %v530_v37 }
  0xdb   : > { %vm561_vm1 = vcmp.eq.f32.partialorder %v1508_v16, %v519_v38  ;;  %vm562_vm6 = vcmp.eq.f32.partialorder %v1516_v7, %v525_v39 }
  0xdc   : > { %vm563_vm7 = vcmp.eq.f32.partialorder %v1521_v25, %v531_v40  ;;  %v564_v43 = vsel %vm561_vm1, %v1337_v44, 8  ;;  %v565_v46 = vsel %vm562_vm6, %v1337_v44, 8  ;;  %v792_v40 = vrot.slane %v1269_v12, 6 }
  0xdd   : > { %v566_v50 = vsel %vm563_vm7, %v1337_v44, 8  ;;  %v567_v53 = vrot.slane %v564_v43, 4  ;;  %v576_v54 = vrot.slane %v565_v46, 4 }
  0xde   : > { %v585_v56 = vrot.slane %v566_v50, 4 }
  0xdf   : > { %vm568_vm12 = vcmp.lt.s32.totalorder %v564_v43, %v567_v53  ;;  %vm577_vm5 = vcmp.lt.s32.totalorder %v565_v46, %v576_v54 }
  0xe0   : > { %vm586_vm3 = vcmp.lt.s32.totalorder %v566_v50, %v585_v56  ;;  %v569_v57 = vsel %vm568_vm12, %v564_v43, %v567_v53  ;;  %v578_v58 = vsel %vm577_vm5, %v565_v46, %v576_v54  ;;  %v784_v54 = vld [vmem:[%s1700_s1 + $0x18] sm:$0xff] }
  0xe1   : > { %v587_v59 = vsel %vm586_vm3, %v566_v50, %v585_v56  ;;  %v570_v60 = vrot.slane %v569_v57, 2  ;;  %v579_v61 = vrot.slane %v578_v58, 2  ;;  %v786_v50 = vld [vmem:[%s1700_s1 + $0x28] sm:$0xff]  ;;  %v791_v56 = vrot.slane %v1263_v11, 6 }
  0xe2   : > { %v588_v62 = vrot.slane %v587_v59, 2 }
  0xe3   : > { %vm571_vm15 = vcmp.lt.s32.totalorder %v569_v57, %v570_v60  ;;  %vm580_vm4 = vcmp.lt.s32.totalorder %v578_v58, %v579_v61 }
  0xe4   : > { %vm589_vm8 = vcmp.lt.s32.totalorder %v587_v59, %v588_v62  ;;  %v572_v63 = vsel %vm571_vm15, %v569_v57, %v570_v60  ;;  %v581_v0 = vsel %vm580_vm4, %v578_v58, %v579_v61  ;;  %vm488_vm15 = vcmask 1042432   ;;  %v785_v61 = vld [vmem:[%s1700_s1 + $0x20] sm:$0xff] }
  0xe5   : > { %v590_v1 = vsel %vm589_vm8, %v587_v59, %v588_v62  ;;  %v573_v2 = vrot.slane %v572_v63, 1  ;;  %v582_v3 = vrot.slane %v581_v0, 1  ;;  %v1567_v51 = vsel %vm488_vm15, %v1526_v28, 0.0 }
  0xe6   : > { %v591_v5 = vrot.slane %v590_v1, 1  ;;  %v1572_v31 = vsel %vm488_vm15, %v1531_v29, 0.0 }
  0xe7   : > { %vm574_vm9 = vcmp.lt.s32.totalorder %v572_v63, %v573_v2  ;;  %vm583_vm10 = vcmp.lt.s32.totalorder %v581_v0, %v582_v3 }
  0xe8   : > { %vm592_vm11 = vcmp.lt.s32.totalorder %v590_v1, %v591_v5  ;;  %v575_v10 = vsel %vm574_vm9, %v572_v63, %v573_v2  ;;  %v584_v6 = vsel %vm583_vm10, %v581_v0, %v582_v3  ;;  %vm511_vm9 = vcmp.gt.f32.partialorder %v1567_v51, 0.5 }
  0xe9   : > { %v593_v13 = vsel %vm592_vm11, %v590_v1, %v591_v5  ;;  %vm594_vm13 = vcmp.eq.s32.totalorder %v1337_v44, %v575_v10  ;;  %vm595_vm1 = vcmp.eq.s32.totalorder %v1337_v44, %v584_v6  ;;  %vm512_vm10 = vcmp.gt.f32.partialorder %v1572_v31, 0.5 }
  0xea   : > { %vm596_vm6 = vcmp.eq.s32.totalorder %v1337_v44, %v593_v13  ;;  %996 = vmatprep.subr.msk.mxu0 %vm595_vm1, %v1161_v15  ;;  %v603_v33 = vsel %vm511_vm9, -1.0, %v1159_v8  ;;  %v604_v29 = vsel %vm512_vm10, -1.0, %v1159_v8  ;;  %vm890_vm1 = vcmask 1044480  }
  0xeb   : > { %1007 = vmatpush3.msk.msra.mxu1 %vm596_vm6, %v1161_v15  ;;  %997 = vmatpush1.msk.msra.mxu0 %vm594_vm13, %v1161_v15 }
  0xec   : > { %1009 = vmatmul.mubr.msk.f32.vlgmr.msra.gmra.mrb[0].mxu1 %vm636_vm14, %v504_v14  ;;  %998 = vmatmul.mubr.msk.f32.vlgmr.msra.gmra.mrb[0].mxu0 %vm636_vm14, %v504_v14  ;;  %vm886_vm14 = vcmask 1043456  }
 0x15f   : > { %v501_v17 = vpop.xlane.xlu1 %500 }
 0x160   : > { %vm502_vm7 = vcmp.eq.f32.partialorder %v501_v17, 0.0 }
 0x161   : > { %v503_v18 = vsel %vm502_vm7, 1e-05, %v501_v17 }
 0x162   : > { %vm534_vm12 = vcmp.eq.f32.partialorder %v1521_v25, %v503_v18  ;;  %vm532_vm5 = vcmp.eq.f32.partialorder %v1508_v16, %v503_v18  ;;  %vm533_vm3 = vcmp.eq.f32.partialorder %v1516_v7, %v503_v18  ;;  %v1563_v7 = vsel %vm488_vm15, %v1536_v47, 0.0 }
 0x163   : > { %v992_v19 = vsel %vm534_vm12, 1.0, %v1159_v8  ;;  %v990_v4 = vsel %vm532_vm5, 1.0, %v1159_v8  ;;  %v991_v21 = vsel %vm533_vm3, 1.0, %v1159_v8  ;;  %vm513_vm4 = vcmp.gt.f32.partialorder %v1563_v7, 0.5 }
 0x164   : > { %v553_v44 = vrot.slane %v992_v19, 4  ;;  %v541_v22 = vrot.slane %v990_v4, 4  ;;  %v547_v23 = vrot.slane %v991_v21, 4  ;;  %v605_v47 = vsel %vm513_vm4, -1.0, %v1159_v8 }
 0x165   : > { %v790_v8 = vrot.slane %v1257_v9, 6 }
 0x166   : > { %v554_v24 = vadd.f32 %v992_v19, %v553_v44  ;;  %v542_v20 = vadd.f32 %v990_v4, %v541_v22  ;;  %v548_v26 = vadd.f32 %v991_v21, %v547_v23 }
 0x168   : > { %v555_v55 = vrot.slane %v554_v24, 2  ;;  %v543_v27 = vrot.slane %v542_v20, 2  ;;  %v549_v41 = vrot.slane %v548_v26, 2 }
 0x16a   : > { %v556_v25 = vadd.f32 %v555_v55, %v554_v24  ;;  %v544_v45 = vadd.f32 %v543_v27, %v542_v20  ;;  %v550_v16 = vadd.f32 %v549_v41, %v548_v26 }
 0x16c   : > { %v557_v42 = vrot.slane %v556_v25, 1  ;;  %v545_v48 = vrot.slane %v544_v45, 1  ;;  %v551_v49 = vrot.slane %v550_v16, 1 }
 0x16e   : > { %v558_v30 = vadd.f32 %v557_v42, %v556_v25  ;;  %v546_v52 = vadd.f32 %v545_v48, %v544_v45  ;;  %v552_v32 = vadd.f32 %v551_v49, %v550_v16 }
 0x170   : > { %vm608_vm8 = vcmp.gt.f32.partialorder %v558_v30, 0.0  ;;  %vm606_vm11 = vcmp.gt.f32.partialorder %v546_v52, 0.0  ;;  %vm607_vm13 = vcmp.gt.f32.partialorder %v552_v32, 0.0 }
 0x171   : > { %v611_v28 = vsel %vm608_vm8, 1.0, %v605_v47  ;;  %v609_v34 = vsel %vm606_vm11, 1.0, %v603_v33  ;;  %v610_v36 = vsel %vm607_vm13, 1.0, %v604_v29 }
 0x172   : > { %v617_v35 = vrot.slane %v611_v28, 1  ;;  %v615_v37 = vrot.slane %v609_v34, 1  ;;  %v616_v38 = vrot.slane %v610_v36, 1 }
 0x174   : > { %v623_v39 = vsel %vm513_vm4, 1.0, %v617_v35  ;;  %v621_v43 = vsel %vm511_vm9, 1.0, %v615_v37  ;;  %v622_v53 = vsel %vm512_vm10, 1.0, %v616_v38 }
 0x175   : > { %v629_v46 = vrot.slane %v623_v39, 1  ;;  %v627_v57 = vrot.slane %v621_v43, 1  ;;  %v628_v9 = vrot.slane %v622_v53, 1 }
 0x177   : > { %v635_v63 = vsel %vm513_vm4, %v629_v46, -1.0  ;;  %v633_v22 = vsel %vm511_vm9, %v627_v57, -1.0  ;;  %v634_v38 = vsel %vm512_vm10, %v628_v9, -1.0 }
 0x1bf   : > { %v777_v12 = vpop.f32.mrb[0].mxu1  ;;  %v706_v60 = vpop.f32.mrb[0].mxu0 }
 0x1c0   : > { %v798_v58 = vsub.f32 %v777_v12, %v792_v40  ;;  %v819_v59 = vsub.f32 %v777_v12, %v786_v50  ;;  %v1010_v62 = vpop.f32.mrb[1].mxu1  ;;  %v796_v0 = vsub.f32 %v706_v60, %v790_v8  ;;  %v817_v1 = vsub.f32 %v706_v60, %v784_v54  ;;  %v708_v2 = vpop.f32.mrb[1].mxu0 }
 0x1c1   : > { %v797_v10 = vsub.f32 %v708_v2, %v791_v56  ;;  %v818_v15 = vsub.f32 %v708_v2, %v785_v61 }
 0x1c2   : > { %v801_v11 = vmul.f32 %v798_v58, %v786_v50  ;;  %v825_v3 = vrot.slane %v819_v59, 2  ;;  %v834_v5 = vrot.slane %v819_v59, 3  ;;  %v799_v6 = vmul.f32 %v796_v0, %v784_v54 }
 0x1c3   : > { %v823_v13 = vrot.slane %v817_v1, 2  ;;  %v832_v14 = vrot.slane %v817_v1, 3  ;;  %v800_v48 = vmul.f32 %v797_v10, %v785_v61  ;;  %v824_v7 = vrot.slane %v818_v15, 2 }
 0x1c4   : > { %v804_v17 = vsel %vm513_vm4, %v801_v11, 0.0  ;;  %v810_v18 = vrot.slane %v801_v11, 1  ;;  %v831_v19 = vsel %vm513_vm4, %v825_v3, 0.0  ;;  %v840_v4 = vsel %vm513_vm4, %v834_v5, 0.0 }
 0x1c5   : > { %v846_v44 = vrot.slane %v804_v17, 7  ;;  %v864_v21 = vrot.slane %v831_v19, 5  ;;  %v802_v23 = vsel %vm511_vm9, %v799_v6, 0.0  ;;  %v808_v20 = vrot.slane %v799_v6, 1 }
 0x1c6   : > { %v816_v24 = vsel %vm513_vm4, %v810_v18, 0.0  ;;  %v829_v26 = vsel %vm511_vm9, %v823_v13, 0.0  ;;  %v838_v55 = vsel %vm511_vm9, %v832_v14, 0.0  ;;  %v873_v41 = vrot.slane %v840_v4, 4 }
 0x1c7   : > { %v855_v27 = vrot.slane %v816_v24, 6  ;;  %v879_v25 = vsel %vm480_vm0, %v635_v63, %v846_v44  ;;  %v844_v45 = vrot.slane %v802_v23, 7  ;;  %v814_v16 = vsel %vm511_vm9, %v808_v20, 0.0 }
 0x1c8   : > { %v862_v42 = vrot.slane %v829_v26, 5  ;;  %v853_v30 = vrot.slane %v814_v16, 6  ;;  %v833_v32 = vrot.slane %v818_v15, 3  ;;  %v803_v28 = vsel %vm512_vm10, %v800_v48, 0.0 }
 0x1c9   : > { %v882_v49 = vsel %vm484_vm2, %v879_v25, %v855_v27  ;;  %v877_v52 = vsel %vm480_vm0, %v633_v22, %v844_v45  ;;  %v809_v33 = vrot.slane %v800_v48, 1  ;;  %v830_v51 = vsel %vm512_vm10, %v824_v7, 0.0 }
 0x1ca   : > { %v885_v47 = vsel %vm488_vm15, %v882_v49, %v864_v21  ;;  %v871_v29 = vrot.slane %v838_v55, 4  ;;  %v880_v34 = vsel %vm484_vm2, %v877_v52, %v853_v30  ;;  %v839_v35 = vsel %vm512_vm10, %v833_v32, 0.0 }
 0x1cb   : > { %v845_v36 = vrot.slane %v803_v28, 7  ;;  %v883_v37 = vsel %vm488_vm15, %v880_v34, %v862_v42  ;;  %v815_v39 = vsel %vm512_vm10, %v809_v33, 0.0  ;;  %v889_v40 = vsel %vm886_vm14, %v885_v47, %v873_v41 }
 0x1cc   : > { %v854_v43 = vrot.slane %v815_v39, 6  ;;  %v887_v50 = vsel %vm886_vm14, %v883_v37, %v871_v29  ;;  %v893_v8 = vsel %vm890_vm1, %v889_v40, 0.0  ;;  %v863_v53 = vrot.slane %v830_v51, 5 }
 0x1cd   : > { %v878_v46 = vsel %vm480_vm0, %v634_v38, %v845_v36  ;;  %v891_v54 = vsel %vm890_vm1, %v887_v50, 0.0  ;;  %896 = vst [vmem:[%s181_s12 + $0x10] sm:$0xff] %v893_v8  ;;  %v872_v31 = vrot.slane %v839_v35, 4 }
 0x1ce   : > { %v881_v56 = vsel %vm484_vm2, %v878_v46, %v854_v43  ;;  %894 = vst [vmem:[%s181_s12] sm:$0xff] %v891_v54 }
 0x1cf   : > { %v884_v12 = vsel %vm488_vm15, %v881_v56, %v863_v53 }
 0x1d0   : > { %v888_v57 = vsel %vm886_vm14, %v884_v12, %v872_v31 }
 0x1d1   : > { %v892_v58 = vsel %vm890_vm1, %v888_v57, 0.0 }
 0x1d2   : > { %895 = vst [vmem:[%s181_s12 + $0x8] sm:$0xff] %v892_v58 }
 0x1d3   : > { %1099 = shalt.err (!%p1096_p8)
}
 0x1d4   : > { %s1100_s26 = scalar_lea.hbm %s1654_s16, 384  ;;  %s1104_s6 = scalar_lea.hbm %s1703_s4, 768 }
 0x1d5   : > { %p1101_p9 = scmp.ne.s32.totalorder %s1654_s16, %s1100_s26  ;;  %p1105_p0 = scmp.lt.u32.totalorder %s1654_s16, %s1703_s4 }
 0x1d6   : > { %p1106_p1 = scmp.lt.u32.totalorder %s1104_s6, %s1100_s26  ;;  %p1108_p3 = scmp.lt.u32.totalorder %s1100_s26, %s1654_s16 }
 0x1d7   : > { %p1102_p12 = pnand %p1101_p9, %p1229_p10 }
 0x1d8   : > { %p1107_p2 = por %p1106_p1, %p1105_p0 }
 0x1d9   : > { %p1103_p13 = pneg %p1102_p12 }
 0x1da   : > { %p1109_p4 = por %p1108_p3, %p1107_p2 }
 0x1dc   : > { %p1110_p5 = pnand %p1109_p4, %p1103_p13 }
 0x1de   : > { %1113 = shalt.err (!%p1110_p5)
}
 0x1df   : > { %1013 = dma.vmem_to_hbm [thread:$0]  (%p1229_p10), %s1656_s13, 384, %s1654_s16, %s898_s23  }
 0x1e0 PF: > { %p1019_p6 = scmp.ge.s32.totalorder %s1150_s22, 2  ;;  %s924_s9 = sand.u32 1, %s1138_s20  }
 0x1e1   : > { %s925_s10 = scalar_lea.sflag [#allocation6], %s924_s9 }
 0x1e2   : > { %p1016_p7 = pnand %p1019_p6, %p1233_p11 }
 0x1e4   : > { %1133 = dma.done.wait (!%p1016_p7), %s925_s10, 384  }
 0x1e5   : > { %1135 = vsyncadd (!%p1016_p7), %s925_s10, 4294966912  ;;  %p20_p8 = scmp.ge.s32.totalorder %s1216_s25, 4   ;;  %s1763_s20 = smov %s1142_s21 }
 0x1e6   : > { %s1764_s21 = smov %s1146_s0  ;;  %s1765_s0 = smov %s1227_s28 }
 0x1e7   : > { %s1766_s22 = smov %s1216_s25  ;;  %22 = sbr.rel (!%p20_p8) target bundleno = 18 (0x12), region = 70 }
 0x1ee   :  { %930 = vsyncpa [#allocation6], 1 }
 0x1ef   :  { %932 = vsyncpa [#allocation6 + $0x1], 1 }

</bundles_post_ra>
